<compile_context>
chip_gen: v7x
topology: tpu7x:2x2x1
jax: 0.10.0
libtpu: 0.0.40
codegen_flags: <defaults>
</compile_context>

<pallas_src>
import jax
import jax.numpy as jnp
from jax.experimental import pallas as pl
from jax.experimental.pallas import tpu as pltpu


# ---------------------------------------------------------------------------
# Kernel
# ---------------------------------------------------------------------------

def _packnet_mlp_kernel(x_ref, w1_ref, b1_ref, w2_ref, b2_ref, o_ref):
    """One batch tile: Linear -> ReLU -> Linear.

    Weights are pre-masked / pre-padded / already bf16 (done once at param-prep
    time), so the per-tile work is two MXU matmuls with f32 accumulation plus
    bias add and ReLU on the VPU.  Only the x tile is cast per iteration.
    """
    h = jnp.dot(x_ref[...].astype(jnp.bfloat16), w1_ref[...],
                preferred_element_type=jnp.float32)
    h = jnp.maximum(h + b1_ref[...], 0.0)
    y = jnp.dot(h.astype(jnp.bfloat16), w2_ref[...],
                preferred_element_type=jnp.float32)
    o_ref[...] = (y + b2_ref[...]).astype(o_ref.dtype)


# ---------------------------------------------------------------------------
# One-time parameter prep (PackNet.set_view analogue)
# ---------------------------------------------------------------------------

def _round_up(n, m):
    return ((n + m - 1) // m) * m


def _pad2(a, rows, cols):
    r, c = a.shape
    if r == rows and c == cols:
        return a
    return jnp.pad(a, ((0, rows - r), (0, cols - c)))


def prepare_packnet_params(params, view_id=-1, weight_dtype=jnp.bfloat16):
    """Fold the task-view mask into the weights, cast to bf16 and pad lane-dense.

    params:  (w1 [D_in, H], m1 [D_in, H] int, b1 [1, H] or [H],
              w2 [H, D_out], m2 [H, D_out] int, b2 [1, D_out] or [D_out])
    view_id: Python int; -1/None means no view (raw weights), mirroring
             PackNet.set_view(None).

    Runs once per set_view, NOT per forward call.
    """
    w1, m1, b1, w2, m2, b2 = params
    d_in, hid = w1.shape
    d_out = w2.shape[1]

    if view_id is not None and int(view_id) >= 0:
        keep1 = jnp.logical_and(m1 <= view_id, m1 > 0)
        keep2 = jnp.logical_and(m2 <= view_id, m2 > 0)
        w1 = jnp.where(keep1, w1, 0.0)
        w2 = jnp.where(keep2, w2, 0.0)

    d_in_p = _round_up(d_in, 128)
    hid_p = _round_up(hid, 128)
    d_out_p = _round_up(d_out, 128)

    return {
        "w1": _pad2(w1, d_in_p, hid_p).astype(weight_dtype),
        "b1": _pad2(jnp.reshape(b1, (1, -1)), 1, hid_p).astype(jnp.float32),
        "w2": _pad2(w2, hid_p, d_out_p).astype(weight_dtype),
        "b2": _pad2(jnp.reshape(b2, (1, -1)), 1, d_out_p).astype(jnp.float32),
        "d_in": d_in,
        "hid": hid,
        "d_out": d_out,
    }


# ---------------------------------------------------------------------------
# Forward wrapper
# ---------------------------------------------------------------------------

def _choose_batch_tiling(batch, batch_tile):
    """Pick (num_tiles, rows_per_tile, padded_batch).

    * tile target defaults to 512 rows (per-grid-step overhead ~0.35us dwarfs
      the MXU work of a 128-row tile),
    * the tile count is derived first and the tile size re-balanced so ragged
      batches never pay up-to-2x padding,
    * large batches get an even tile count so dimension_semantics=("parallel",)
      splits across both v7x TensorCores.
    """
    b8 = _round_up(max(batch, 1), 8)
    tb_target = max(8, min(_round_up(batch_tile, 8), b8))
    n_tiles = pl.cdiv(b8, tb_target)
    if b8 >= 512 and n_tiles % 2:
        n_tiles += 1
    tb = _round_up(pl.cdiv(b8, n_tiles), 8)
    return n_tiles, tb, n_tiles * tb


def _maybe_buffered_spec(block_shape, index_map, nbuf):
    """BlockSpec with optional deeper pipelining; falls back if unsupported."""
    if not nbuf or nbuf <= 2:
        return pl.BlockSpec(block_shape, index_map)
    try:
        return pl.BlockSpec(block_shape, index_map,
                            pipeline_mode=pl.Buffered(nbuf))
    except (AttributeError, TypeError):
        return pl.BlockSpec(block_shape, index_map)


def packnet_forward(x, prepared, batch_tile=512):
    """PackNet.forward(x) with prepared (pre-masked, bf16, padded) parameters.

    x:        [B, D_in] float32
    prepared: output of prepare_packnet_params
    """
    w1_p, b1_p = prepared["w1"], prepared["b1"]
    w2_p, b2_p = prepared["w2"], prepared["b2"]
    d_in, d_out = prepared["d_in"], prepared["d_out"]

    batch = x.shape[0]
    assert x.shape[1] == d_in, "input feature dim mismatch"
    d_in_p, hid_p = w1_p.shape
    d_out_p = w2_p.shape[1]

    n_tiles, tb, b_pad = _choose_batch_tiling(batch, batch_tile)
    x_p = _pad2(x, b_pad, d_in_p)            # only x is padded per call

    # Deeper buffering on the batch-streamed operands only when the grid is
    # long enough for the x-tile DMA latency to be exposed.
    nbuf = 3 if n_tiles >= 3 else None
    x_spec = _maybe_buffered_spec((tb, d_in_p), lambda i: (i, 0), nbuf)
    out_spec = _maybe_buffered_spec((tb, d_out_p), lambda i: (i, 0), nbuf)
    w1_spec = pl.BlockSpec((d_in_p, hid_p), lambda i: (0, 0))
    b1_spec = pl.BlockSpec((1, hid_p), lambda i: (0, 0))
    w2_spec = pl.BlockSpec((hid_p, d_out_p), lambda i: (0, 0))
    b2_spec = pl.BlockSpec((1, d_out_p), lambda i: (0, 0))

    # VMEM budget: resident weights (+double buffer), streamed x/out tiles,
    # plus the f32 hidden activation / accumulator inside the body.  Only
    # raise the scoped limit when we would exceed the smallest default
    # (v5e: 16 MiB); cap at v7x's 64 MiB physical VMEM.
    bufs = nbuf or 2
    weight_bytes = w1_p.nbytes + b1_p.nbytes + w2_p.nbytes + b2_p.nbytes
    vmem_est = (2 * weight_bytes
                + bufs * (tb * d_in_p * 4 + tb * d_out_p * 4)
                + tb * hid_p * 4 + tb * d_out_p * 4)
    vmem_limit = None
    if vmem_est > 16 * 1024 * 1024:
        vmem_limit = int(min(max(vmem_est * 5 // 4, 32 * 1024 * 1024),
                             64 * 1024 * 1024))

    flops = 2 * b_pad * (d_in_p * hid_p + hid_p * d_out_p)
    bytes_accessed = int(x_p.nbytes + weight_bytes + b_pad * d_out_p * 4)

    y_p = pl.pallas_call(
        _packnet_mlp_kernel,
        out_shape=jax.ShapeDtypeStruct((b_pad, d_out_p), x.dtype),
        grid=(n_tiles,),
        in_specs=[x_spec, w1_spec, b1_spec, w2_spec, b2_spec],
        out_specs=out_spec,
        compiler_params=pltpu.CompilerParams(
            dimension_semantics=("parallel",),
            vmem_limit_bytes=vmem_limit),
        cost_estimate=pl.CostEstimate(
            flops=int(flops), transcendentals=0, bytes_accessed=bytes_accessed),
    )(x_p, w1_p, b1_p, w2_p, b2_p)

    return y_p[:batch, :d_out]


# ---------------------------------------------------------------------------
# Pure-JAX reference (mirrors the kernel's bf16 matmul / f32 accumulate)
# ---------------------------------------------------------------------------

def packnet_forward_ref(x, params, view_id=-1):
    w1, m1, b1, w2, m2, b2 = params

    def eff(w, m):
        if view_id is None or view_id < 0:
            return w
        keep = jnp.logical_and(m <= view_id, m > 0)
        return jnp.where(keep, w, 0.0)

    h = jnp.dot(x.astype(jnp.bfloat16), eff(w1, m1).astype(jnp.bfloat16),
                preferred_element_type=jnp.float32) + jnp.reshape(b1, (1, -1))
    h = jnp.maximum(h, 0.0)
    y = jnp.dot(h.astype(jnp.bfloat16), eff(w2, m2).astype(jnp.bfloat16),
                preferred_element_type=jnp.float32) + jnp.reshape(b2, (1, -1))
    return y


# ---------------------------------------------------------------------------
# Self-test
# ---------------------------------------------------------------------------

if __name__ == "__main__":
    key = jax.random.PRNGKey(0)
    B, D_IN, HIDDEN, D_OUT = 8, 32, 32, 4
    TASK_ID, TOTAL_TASKS = 1, 4

    k1, k2, k3, k4 = jax.random.split(key, 4)
    w1 = jax.random.normal(k1, (D_IN, HIDDEN), dtype=jnp.float32) * 0.1
    b1 = jnp.zeros((1, HIDDEN), dtype=jnp.float32)
    w2 = jax.random.normal(k2, (HIDDEN, D_OUT), dtype=jnp.float32) * 0.1
    b2 = jnp.zeros((1, D_OUT), dtype=jnp.float32)

    # PackNet masks: torch.long zeros at __init__ -> int32 zeros here.  Also a
    # deterministic post-prune-style mask (task ids 0..TOTAL_TASKS-1) to
    # exercise the view-masking path folded in at prep time.
    m1_init = jnp.zeros((D_IN, HIDDEN), dtype=jnp.int32)
    m2_init = jnp.zeros((HIDDEN, D_OUT), dtype=jnp.int32)
    m1_pruned = (jax.lax.iota(jnp.int32, D_IN * HIDDEN) % TOTAL_TASKS).reshape(D_IN, HIDDEN)
    m2_pruned = (jax.lax.iota(jnp.int32, HIDDEN * D_OUT) % TOTAL_TASKS).reshape(HIDDEN, D_OUT)

    x = jax.random.normal(k3, (B, D_IN), dtype=jnp.float32)

    # 1) Fresh PackNet (no view set): forward == model(x) with raw weights.
    params0 = (w1, m1_init, b1, w2, m2_init, b2)
    prep0 = prepare_packnet_params(params0, view_id=-1)      # one-time prep
    y0 = jax.block_until_ready(packnet_forward(x, prep0))
    y0_ref = packnet_forward_ref(x, params0, view_id=-1)
    assert y0.shape == (B, D_OUT)
    assert jnp.allclose(y0, y0_ref, atol=1e-2, rtol=1e-2), "no-view forward mismatch"

    # 2) After set_view(task_id): weights gated by (mask <= task_id) & (mask > 0),
    #    folded into the bf16 weights once at prep time.
    params1 = (w1, m1_pruned, b1, w2, m2_pruned, b2)
    prep1 = prepare_packnet_params(params1, view_id=TASK_ID)  # one-time prep
    y1 = jax.block_until_ready(packnet_forward(x, prep1))
    y1_ref = packnet_forward_ref(x, params1, view_id=TASK_ID)
    assert y1.shape == (B, D_OUT)
    assert jnp.allclose(y1, y1_ref, atol=1e-2, rtol=1e-2), "masked forward mismatch"

    # 3) Ragged large batch: exercises adaptive tiling (no 2x padding),
    #    multi-tile parallel grid and deeper x/out buffering; params reused
    #    untouched from prep (nothing re-padded / re-masked per call).
    B_BIG = 777
    x_big = jax.random.normal(k4, (B_BIG, D_IN), dtype=jnp.float32)
    y_big = jax.block_until_ready(packnet_forward(x_big, prep1, batch_tile=256))
    y_big_ref = packnet_forward_ref(x_big, params1, view_id=TASK_ID)
    assert y_big.shape == (B_BIG, D_OUT)
    assert jnp.allclose(y_big, y_big_ref, atol=1e-2, rtol=1e-2), "large-batch mismatch"

    # TODO(synk): prune()'s top-k sort over flattened weights and
    # adjust_gradients()/set_view()'s in-place parameter bookkeeping are
    # host/setup-time logic, not part of the forward pass, and are handled in
    # prepare_packnet_params / left out of the kernel.
    print("KERNEL_OK")
</pallas_src>

<mosaic_0001>
module attributes {stable_mosaic.version = 11 : i64} {
  func.func @_packnet_mlp_kernel(%arg0: i32, %arg1: memref<8x128xf32, #tpu.memory_space<vmem>>, %arg2: memref<128x128xbf16, #tpu.memory_space<vmem>>, %arg3: memref<1x128xf32, #tpu.memory_space<vmem>>, %arg4: memref<128x128xbf16, #tpu.memory_space<vmem>>, %arg5: memref<1x128xf32, #tpu.memory_space<vmem>>, %arg6: memref<8x128xf32, #tpu.memory_space<vmem>>) attributes {dimension_semantics = [#tpu.dimension_semantics<parallel>], iteration_bounds = array<i64: 1>, scalar_prefetch = 0 : i64, scratch_operands = 0 : i64, tpu.core_type = #tpu.core_type<tc>, window_params = [{transform_indices = @transform_0, window_bounds = array<i64: 8, 128>}, {pipeline_mode = #tpu.pipeline_mode<synchronous>, transform_indices = @transform_1, window_bounds = array<i64: 128, 128>}, {pipeline_mode = #tpu.pipeline_mode<synchronous>, transform_indices = @transform_2, window_bounds = array<i64: 1, 128>}, {pipeline_mode = #tpu.pipeline_mode<synchronous>, transform_indices = @transform_3, window_bounds = array<i64: 128, 128>}, {pipeline_mode = #tpu.pipeline_mode<synchronous>, transform_indices = @transform_4, window_bounds = array<i64: 1, 128>}, {transform_indices = @transform_5, window_bounds = array<i64: 8, 128>}]} {
    %c0 = arith.constant 0 : index
    %c0_0 = arith.constant 0 : index
    %0 = vector.load %arg1[%c0, %c0_0] : memref<8x128xf32, #tpu.memory_space<vmem>>, vector<8x128xf32>
    %1 = arith.truncf %0 : vector<8x128xf32> to vector<8x128xbf16>
    %c0_1 = arith.constant 0 : index
    %c0_2 = arith.constant 0 : index
    %2 = vector.load %arg2[%c0_1, %c0_2] : memref<128x128xbf16, #tpu.memory_space<vmem>>, vector<128x128xbf16>
    %cst = arith.constant dense<0.000000e+00> : vector<8x128xf32>
    %3 = tpu.matmul %1, %2, %cst {dimension_numbers = #tpu.dot_dimension_numbers<[1], [0], [0], [1], [0, 0, 1, 1], [], []>} : vector<8x128xbf16>, vector<128x128xbf16>, vector<8x128xf32> -> vector<8x128xf32>
    %c0_3 = arith.constant 0 : index
    %c0_4 = arith.constant 0 : index
    %4 = vector.load %arg3[%c0_3, %c0_4] : memref<1x128xf32, #tpu.memory_space<vmem>>, vector<1x128xf32>
    %5 = vector.broadcast %4 : vector<1x128xf32> to vector<8x128xf32>
    %6 = arith.addf %3, %5 : vector<8x128xf32>
    %cst_5 = arith.constant 0.000000e+00 : f32
    %7 = vector.broadcast %cst_5 : f32 to vector<8x128xf32>
    %8 = arith.maximumf %6, %7 : vector<8x128xf32>
    %9 = arith.truncf %8 : vector<8x128xf32> to vector<8x128xbf16>
    %c0_6 = arith.constant 0 : index
    %c0_7 = arith.constant 0 : index
    %10 = vector.load %arg4[%c0_6, %c0_7] : memref<128x128xbf16, #tpu.memory_space<vmem>>, vector<128x128xbf16>
    %cst_8 = arith.constant dense<0.000000e+00> : vector<8x128xf32>
    %11 = tpu.matmul %9, %10, %cst_8 {dimension_numbers = #tpu.dot_dimension_numbers<[1], [0], [0], [1], [0, 0, 1, 1], [], []>} : vector<8x128xbf16>, vector<128x128xbf16>, vector<8x128xf32> -> vector<8x128xf32>
    %c0_9 = arith.constant 0 : index
    %c0_10 = arith.constant 0 : index
    %12 = vector.load %arg5[%c0_9, %c0_10] : memref<1x128xf32, #tpu.memory_space<vmem>>, vector<1x128xf32>
    %13 = vector.broadcast %12 : vector<1x128xf32> to vector<8x128xf32>
    %14 = arith.addf %11, %13 : vector<8x128xf32>
    %c0_11 = arith.constant 0 : index
    %c0_12 = arith.constant 0 : index
    %15 = vector.load %arg6[%c0_11, %c0_12] : memref<8x128xf32, #tpu.memory_space<vmem>>, vector<8x128xf32>
    tpu.vector_store %arg6[%c0_11, %c0_12], %14 {strides = array<i32>} : memref<8x128xf32, #tpu.memory_space<vmem>>, vector<8x128xf32>,
    return
  }
  func.func @transform_0(%arg0: i32) -> (i32, i32) {
    %c0_i32 = arith.constant 0 : i32
    %c0_i32_0 = arith.constant 0 : i32
    return %arg0, %c0_i32 : i32, i32
  }
  func.func @transform_1(%arg0: i32) -> (i32, i32) {
    %c0_i32 = arith.constant 0 : i32
    %c0_i32_0 = arith.constant 0 : i32
    %c0_i32_1 = arith.constant 0 : i32
    return %c0_i32, %c0_i32_0 : i32, i32
  }
  func.func @transform_2(%arg0: i32) -> (i32, i32) {
    %c0_i32 = arith.constant 0 : i32
    %c0_i32_0 = arith.constant 0 : i32
    %c0_i32_1 = arith.constant 0 : i32
    return %c0_i32, %c0_i32_0 : i32, i32
  }
  func.func @transform_3(%arg0: i32) -> (i32, i32) {
    %c0_i32 = arith.constant 0 : i32
    %c0_i32_0 = arith.constant 0 : i32
    %c0_i32_1 = arith.constant 0 : i32
    return %c0_i32, %c0_i32_0 : i32, i32
  }
  func.func @transform_4(%arg0: i32) -> (i32, i32) {
    %c0_i32 = arith.constant 0 : i32
    %c0_i32_0 = arith.constant 0 : i32
    %c0_i32_1 = arith.constant 0 : i32
    return %c0_i32, %c0_i32_0 : i32, i32
  }
  func.func @transform_5(%arg0: i32) -> (i32, i32) {
    %c0_i32 = arith.constant 0 : i32
    %c0_i32_0 = arith.constant 0 : i32
    return %arg0, %c0_i32 : i32, i32
  }
}

</mosaic_0001>

<bundles_post_ra>
// kernel: tpu_custom_call.1
= control target key start
LH: loop header
LB: loop body
LE: loop exit
PB: predicated region body
PF: predicated region fallthrough
CT: control target
= control target key end

     0   :  { %10 = vsyncpa [#allocation3], 0  ;;  %s596_s0 = inlined_call_operand.hbm [shape: f32[8,128], index: 0, kind: input, shape index: {}]   ;;  %s597_s1 = inlined_call_operand.hbm [shape: bf16[128,128], index: 1, kind: input, shape index: {}]   ;;  %s598_s2 = inlined_call_operand.vmem [shape: f32[1,128], index: 2, kind: input, shape index: {}]   ;;  %s599_s3 = inlined_call_operand.hbm [shape: bf16[128,128], index: 3, kind: input, shape index: {}]   ;;  %s600_s4 = inlined_call_operand.vmem [shape: f32[1,128], index: 4, kind: input, shape index: {}]   ;;  %s601_s5 = inlined_call_operand.hbm [shape: f32[8,128], index: 5, kind: output, shape index: {}]  }
   0x1   :  { %11 = vsyncpa [#allocation6], 0 }
   0x2   :  { %12 = vsyncpa [#allocation4], 0  ;;  %s498_s18 = smov [#allocation5]   ;;  %s404_s22 = scalar_lea.hbm %s597_s1, 1024 }
   0x3   :  { %s28_s19 = sshll.u32 %s498_s18, 4  ;;  %p405_p0 = scmp.ne.s32.totalorder %s597_s1, %s404_s22  ;;  %s29_s19 = int_to_ptr.vmem [resolvable:$true] %s28_s19 }
   0x4   :  { %p408_p1 = scmp.lt.u32.totalorder %s404_s22, %s597_s1 }
   0x6   :  { %p410_p2 = pnand %p408_p1, %p405_p0 }
   0x8   :  { %413 = shalt.err (!%p410_p2)
}
   0x9   :  { %s414_s27 = scalar_lea.vmem %s29_s19, 1024  ;;  %p419_p4 = scmp.lt.s32.totalorder %s29_s19, %s29_s19 }
   0xa   :  { %p415_p3 = scmp.ne.s32.totalorder %s29_s19, %s414_s27  ;;  %p420_p5 = scmp.lt.s32.totalorder %s414_s27, %s414_s27 }
   0xc   :  { %p421_p6 = por %p420_p5, %p419_p4 }
   0xe   :  { %p422_p7 = pnand %p421_p6, %p415_p3 }
  0x10   :  { %425 = shalt.err (!%p422_p7)
}
  0x11   :  { %s499_s28 = smov 64   ;;  %s500_s29 = smov 4  }
  0x12   :  { %34 = dma.hbm_to_vmem [thread:$0]  %s597_s1, 1024, %s29_s19, [#allocation6], %s499_s28, %s499_s28, %s500_s29  }
  0x13   :  { %s501_s7 = smov [#allocation2]   ;;  %s502_s9 = smov [#allocation7]  }
  0x14   :  { %s19_s8 = sshll.u32 %s501_s7, 4  ;;  %s42_s10 = sshll.u32 %s502_s9, 4  ;;  %s20_s8 = int_to_ptr.vmem [resolvable:$true] %s19_s8  ;;  %s43_s10 = int_to_ptr.vmem [resolvable:$true] %s42_s10 }
  0x15   :  { %s426_s13 = scalar_lea.hbm %s596_s0, 128 }
  0x16   :  { %p427_p8 = scmp.ne.s32.totalorder %s596_s0, %s426_s13  ;;  %p430_p9 = scmp.lt.u32.totalorder %s426_s13, %s596_s0 }
  0x18   :  { %p432_p10 = pnand %p430_p9, %p427_p8 }
  0x1a   :  { %435 = shalt.err (!%p432_p10)
}
  0x1b   :  { %s436_s1 = scalar_lea.vmem %s20_s8, 128  ;;  %p441_p12 = scmp.lt.s32.totalorder %s20_s8, %s20_s8 }
  0x1c   :  { %p437_p11 = scmp.ne.s32.totalorder %s20_s8, %s436_s1  ;;  %p442_p13 = scmp.lt.s32.totalorder %s436_s1, %s436_s1 }
  0x1e   :  { %p443_p0 = por %p442_p13, %p441_p12 }
  0x20   :  { %p444_p1 = pnand %p443_p0, %p437_p11 }
  0x22   :  { %447 = shalt.err (!%p444_p1)
}
  0x23   :  { %22 = dma.hbm_to_vmem [thread:$0]  %s596_s0, 128, %s20_s8, [#allocation3]  }
  0x24   :  { %s448_s22 = scalar_lea.hbm %s599_s3, 1024 }
  0x25   :  { %p449_p2 = scmp.ne.s32.totalorder %s599_s3, %s448_s22  ;;  %p452_p3 = scmp.lt.u32.totalorder %s448_s22, %s599_s3 }
  0x27   :  { %p454_p4 = pnand %p452_p3, %p449_p2 }
  0x29   :  { %457 = shalt.err (!%p454_p4)
}
  0x2a   :  { %s458_s27 = scalar_lea.vmem %s43_s10, 1024  ;;  %p463_p6 = scmp.lt.s32.totalorder %s43_s10, %s43_s10 }
  0x2b   :  { %p459_p5 = scmp.ne.s32.totalorder %s43_s10, %s458_s27  ;;  %p464_p7 = scmp.lt.s32.totalorder %s458_s27, %s458_s27 }
  0x2d   :  { %p465_p8 = por %p464_p7, %p463_p6 }
  0x2f   :  { %p466_p9 = pnand %p465_p8, %p459_p5 }
  0x31   :  { %469 = shalt.err (!%p466_p9)
}
  0x32   :  { %48 = dma.hbm_to_vmem [thread:$0]  %s599_s3, 1024, %s43_s10, [#allocation6], %s499_s28, %s499_s28, %s500_s29  }
  0x33   :  { %492 = dma.done.wait [#allocation3], 128  }
  0x34   :  { %493 = vsyncadd [#allocation3], 4294967168 }
  0x35   :  { %494 = dma.done.wait [#allocation6], 2048  }
  0x36   :  { %495 = vsyncadd [#allocation6], 4294965248  ;;  %v503_v0 = vmov 0.0   ;;  %vm504_vm0 = vmmov 0   ;;  %v388_v1 = vld [vmem:[#allocation5] sm:$0xff]   ;;  %v389_v2 = vld [vmem:[#allocation5 + $0x8] sm:$0xff]  }
  0x37   :  { %340 = vmatprep.subr.bf16.mxu0 %v503_v0  ;;  %356 = vmatprep.mubr.msk.bf16.mxu0 %vm504_vm0, %v503_v0  ;;  %v390_v3 = vld [vmem:[#allocation5 + $0x10] sm:$0xff]   ;;  %v396_v4 = vld [vmem:[#allocation7] sm:$0xff]   ;;  %v391_v5 = vld [vmem:[#allocation5 + $0x18] sm:$0xff]   ;;  %s505_s7 = smov [#allocation8]  }
  0x38   :  { %360 = vmatprep.subr.bf16.mxu1 %v503_v0  ;;  %376 = vmatprep.mubr.msk.bf16.mxu1 %vm504_vm0, %v503_v0  ;;  %v397_v6 = vld [vmem:[#allocation7 + $0x8] sm:$0xff]   ;;  %v392_v7 = vld [vmem:[#allocation5 + $0x20] sm:$0xff]   ;;  %v398_v8 = vld [vmem:[#allocation7 + $0x10] sm:$0xff]   ;;  %s294_s8 = sshll.u32 %s505_s7, 4  ;;  %s295_s8 = int_to_ptr.vmem [resolvable:$true] %s294_s8 }
  0x39   :  { %341 = vmatpush3.bf16.msra.mxu0 %v388_v1  ;;  %361 = vmatpush3.bf16.msra.mxu1 %v396_v4  ;;  %v393_v9 = vld [vmem:[#allocation5 + $0x28] sm:$0xff]   ;;  %v399_v10 = vld [vmem:[#allocation7 + $0x18] sm:$0xff]   ;;  %v394_v11 = vld [vmem:[#allocation5 + $0x30] sm:$0xff]   ;;  %p475_p11 = scmp.lt.s32.totalorder %s295_s8, %s295_s8 }
  0x3a   :  { %342 = vmatprep.subr.bf16.mxu0 %v503_v0  ;;  %362 = vmatprep.subr.bf16.mxu1 %v503_v0  ;;  %v400_v12 = vld [vmem:[#allocation7 + $0x20] sm:$0xff]   ;;  %v395_v13 = vld [vmem:[#allocation5 + $0x38] sm:$0xff]   ;;  %v401_v15 = vld [vmem:[#allocation7 + $0x28] sm:$0xff]  }
  0x3b   :  { %v61_v14 = vld [vmem:[#allocation2] sm:$0xff]  ;;  %v402_v17 = vld [vmem:[#allocation7 + $0x30] sm:$0xff]  }
  0x3c   :  { %v62_v16 = vpack.c.bf16 %v61_v14, %v61_v14  ;;  %v403_v18 = vld [vmem:[#allocation7 + $0x38] sm:$0xff]  }
  0x3d   :  { %343 = vmatpush3.bf16.msra.mxu0 %v389_v2  ;;  %363 = vmatpush3.bf16.msra.mxu1 %v397_v6  ;;  %v304_v19 = vld [vmem:[%s598_s2] ss:$0 sm:$0xff]  ;;  %s470_s2 = scalar_lea.vmem %s295_s8, 128 }
  0x3e   :  { %344 = vmatprep.subr.bf16.mxu0 %v503_v0  ;;  %364 = vmatprep.subr.bf16.mxu1 %v503_v0  ;;  %v313_v27 = vld [vmem:[%s600_s4] ss:$0 sm:$0xff]  ;;  %p471_p10 = scmp.ne.s32.totalorder %s295_s8, %s470_s2  ;;  %p476_p12 = scmp.lt.s32.totalorder %s470_s2, %s470_s2 }
  0x40   :  { %p477_p13 = por %p476_p12, %p475_p11 }
  0x41   :  { %345 = vmatpush3.bf16.msra.mxu0 %v390_v3  ;;  %365 = vmatpush3.bf16.msra.mxu1 %v398_v8 }
  0x42   :  { %346 = vmatprep.subr.bf16.mxu0 %v503_v0  ;;  %366 = vmatprep.subr.bf16.mxu1 %v503_v0  ;;  %p478_p0 = pnand %p477_p13, %p471_p10 }
  0x45   :  { %347 = vmatpush3.bf16.msra.mxu0 %v391_v5  ;;  %367 = vmatpush3.bf16.msra.mxu1 %v399_v10 }
  0x46   :  { %348 = vmatprep.subr.bf16.mxu0 %v503_v0  ;;  %368 = vmatprep.subr.bf16.mxu1 %v503_v0 }
  0x49   :  { %349 = vmatpush3.bf16.msra.mxu0 %v392_v7  ;;  %369 = vmatpush3.bf16.msra.mxu1 %v400_v12 }
  0x4a   :  { %350 = vmatprep.subr.bf16.mxu0 %v503_v0  ;;  %370 = vmatprep.subr.bf16.mxu1 %v503_v0 }
  0x4d   :  { %351 = vmatpush3.bf16.msra.mxu0 %v393_v9  ;;  %371 = vmatpush3.bf16.msra.mxu1 %v401_v15 }
  0x4e   :  { %352 = vmatprep.subr.bf16.mxu0 %v503_v0  ;;  %372 = vmatprep.subr.bf16.mxu1 %v503_v0 }
  0x51   :  { %353 = vmatpush3.bf16.msra.mxu0 %v394_v11  ;;  %373 = vmatpush3.bf16.msra.mxu1 %v402_v17 }
  0x52   :  { %354 = vmatprep.subr.bf16.mxu0 %v503_v0  ;;  %374 = vmatprep.subr.bf16.mxu1 %v503_v0 }
  0x55   :  { %355 = vmatpush3.bf16.msra.mxu0 %v395_v13  ;;  %375 = vmatpush3.bf16.msra.mxu1 %v403_v18 }
  0x58   :  { %357 = vmatmul.mubr.bf16.vlgmr.msra.gmra.mrb[0].mxu0 %v62_v16 }
 0x12b   :  { %v168_v20 = vpop.f32.mrb[0].mxu0 }
 0x12c   :  { %v169_v21 = vadd.f32 %v304_v19, %v168_v20  ;;  %v358_v22 = vpop.f32.mrb[1].mxu0 }
 0x12d   :  { %v171_v23 = vpop.f32.mrb[2].mxu0 }
 0x12e   :  { %v174_v24 = vmax.f32 %v169_v21, 0.0  ;;  %v359_v25 = vpop.f32.mrb[3].mxu0 }
 0x130   :  { %v175_v26 = vpack.c.bf16 %v174_v24, %v174_v24 }
 0x132   :  { %377 = vmatmul.mubr.bf16.vlgmr.msra.gmra.mrb[0].mxu1 %v175_v26 }
 0x205   :  { %v281_v28 = vpop.f32.mrb[0].mxu1 }
 0x206   :  { %v282_v29 = vadd.f32 %v313_v27, %v281_v28  ;;  %v378_v30 = vpop.f32.mrb[1].mxu1 }
 0x207   :  { %v284_v31 = vpop.f32.mrb[2].mxu1 }
 0x208   :  { %287 = vst [vmem:[#allocation8] sm:$0xff] %v282_v29  ;;  %v379_v32 = vpop.f32.mrb[3].mxu1 }
 0x209   :  { %481 = shalt.err (!%p478_p0)
}
 0x20a   :  { %s482_s4 = scalar_lea.hbm %s601_s5, 128 }
 0x20b   :  { %p483_p1 = scmp.ne.s32.totalorder %s601_s5, %s482_s4  ;;  %p486_p2 = scmp.lt.u32.totalorder %s482_s4, %s601_s5 }
 0x20d   :  { %p488_p3 = pnand %p486_p2, %p483_p1 }
 0x20f   :  { %491 = shalt.err (!%p488_p3)
}
 0x210   :  { %297 = dma.vmem_to_hbm [thread:$0]  %s295_s8, 128, %s601_s5, [#allocation4]  }
 0x211   :  { %496 = dma.done.wait [#allocation4], 128  }
 0x212   :  { %497 = vsyncadd [#allocation4], 4294967168 }
 0x213   :  { %301 = vsyncpa [#allocation3], 1 }
 0x214   :  { %302 = vsyncpa [#allocation6], 1 }
 0x215   :  { %303 = vsyncpa [#allocation4], 1 }

</bundles_post_ra>
